<compile_context>
chip_gen: v7x
topology: tpu7x:2x2x1
jax: 0.10.0
libtpu: 0.0.40
codegen_flags: <defaults>
</compile_context>

<pallas_src>
import functools

import jax
import jax.numpy as jnp
from jax.experimental import pallas as pl
from jax.experimental.pallas import tpu as pltpu


def _round_up(n, m):
    return ((n + m - 1) // m) * m


def _states_pred_kernel(x_ref, w1_ref, b1_ref, w2_ref, b2_ref, w3_ref, b3_ref,
                        out_ref, *, class_num, out_len):
    B = x_ref.shape[0]
    OUT_PAD = out_ref.shape[1]

    # Layer 1: Linear(E -> E//4) + ReLU (MXU). Operands in their stored dtype
    # (single-pass bf16 matmul if the caller stores bf16), f32 accumulation.
    h1 = jnp.dot(x_ref[...], w1_ref[...],
                 preferred_element_type=jnp.float32)
    h1 = jnp.maximum(h1 + b1_ref[...].astype(jnp.float32), 0.0)

    # Layer 2: Linear(E//4 -> E//16) + ReLU (MXU).
    h2 = jnp.dot(h1, w2_ref[...],
                 preferred_element_type=jnp.float32)
    h2 = jnp.maximum(h2 + b2_ref[...].astype(jnp.float32), 0.0)

    # Layer 3: Linear(E//16 -> out_len), lane-padded to OUT_PAD.
    w3 = w3_ref[...].astype(jnp.float32)                  # (H2, OUT_PAD)
    b3 = b3_ref[...].astype(jnp.float32)                  # (1, OUT_PAD)
    H2 = w3.shape[0]
    if H2 <= 8:
        # Tiny contraction dim: unrolled VPU broadcast-mul-add avoids a
        # serialized MXU result-FIFO round trip on v5e/v6e (MRF); on v7x the
        # dot branch below would be equivalent.
        out = jnp.broadcast_to(b3, (B, OUT_PAD))
        for k in range(H2):                               # static unroll
            out = out + h2[:, k:k + 1] * w3[k:k + 1, :]
    else:
        out = jnp.dot(h2, w3, preferred_element_type=jnp.float32) + b3

    # Lane masks for the fused output slab [softmax(probs) | coords | 0].
    lane = jax.lax.broadcasted_iota(jnp.int32, (B, OUT_PAD), 1)
    class_mask = lane < class_num
    coord_mask = jnp.logical_and(lane >= class_num, lane < out_len)

    # Numerically stable softmax over the class logits only. Exact divide:
    # the kernel is memory-bound, so the exact reciprocal is free and keeps
    # sum(probs) == 1 to f32 precision for downstream sampling / NLL.
    logits = jnp.where(class_mask, out, jnp.float32(-1e30))
    m = jnp.max(logits, axis=-1, keepdims=True)
    e = jnp.exp(logits - m)
    probs = e / jnp.sum(e, axis=-1, keepdims=True)

    fused = jnp.where(class_mask, probs,
                      jnp.where(coord_mask, out, jnp.float32(0.0)))
    out_ref[...] = fused.astype(out_ref.dtype)


def prepare_params(params, *, class_num, len_traj_pred):
    """One-time weight prep, hoisted out of the forward path: zero-pad the
    last Linear layer to the lane-padded fused-output width."""
    out_len = class_num + 2 * len_traj_pred
    out_pad = _round_up(out_len, 32)
    p = dict(params)
    p["w3"] = jnp.pad(params["w3"], ((0, 0), (0, out_pad - params["w3"].shape[1])))
    p["b3"] = jnp.pad(params["b3"], ((0, 0), (0, out_pad - params["b3"].shape[1])))
    return p


def states_pred_net(x, params, *, embedding_dim, class_num, len_traj_pred,
                    tile_b=None, out_dtype=jnp.float32):
    """Pallas implementation of StatesPredNet.forward (NaviBridge branch).

    x: any shape ending in embedding_dim (reshaped to (-1, E) like PyTorch).
    Returns (class_probs [N, class_num], coords [N, len_traj_pred, 2]).
    """
    E = embedding_dim
    H1, H2 = E // 4, E // 16
    out_len = class_num + 2 * len_traj_pred
    OUT_PAD = _round_up(out_len, 32)   # narrow slab: 4x less HBM write vs 128

    x2 = x.reshape((-1, E))            # keep input dtype; no batch padding
    N = x2.shape[0]

    # Use prepared (pre-padded) params if available; otherwise pad per call.
    w3p, b3p = params["w3"], params["b3"]
    if w3p.shape[1] != OUT_PAD:
        w3p = jnp.pad(w3p, ((0, 0), (0, OUT_PAD - w3p.shape[1])))
        b3p = jnp.pad(b3p, ((0, 0), (0, OUT_PAD - b3p.shape[1])))

    if tile_b is None:
        if N <= 1024:
            # Small N: one grid step, latency-bound.
            tile_b = max(8, _round_up(N, 8))
        else:
            # Large N: ~2048-row tiles (>=85% of HBM roofline per tile-size
            # curve, amortizes ~0.35us/step overhead), capped at ceil(N/2) so
            # the 'parallel' axis gives both v7x TensorCores work.
            tile_b = min(2048, _round_up(pl.cdiv(N, 2), 8))

    grid = (pl.cdiv(N, tile_b),)       # ragged last block handled by Pallas
    kernel = functools.partial(_states_pred_kernel,
                               class_num=class_num, out_len=out_len)

    fused = pl.pallas_call(
        kernel,
        out_shape=jax.ShapeDtypeStruct((N, OUT_PAD), out_dtype),
        grid_spec=pltpu.PrefetchScalarGridSpec(
            num_scalar_prefetch=0,
            grid=grid,
            in_specs=[
                pl.BlockSpec((tile_b, E), lambda i: (i, 0)),      # x tile
                pl.BlockSpec((E, H1), lambda i: (0, 0)),          # w1
                pl.BlockSpec((1, H1), lambda i: (0, 0)),          # b1
                pl.BlockSpec((H1, H2), lambda i: (0, 0)),         # w2
                pl.BlockSpec((1, H2), lambda i: (0, 0)),          # b2
                pl.BlockSpec((H2, OUT_PAD), lambda i: (0, 0)),    # w3 (padded)
                pl.BlockSpec((1, OUT_PAD), lambda i: (0, 0)),     # b3 (padded)
            ],
            out_specs=pl.BlockSpec((tile_b, OUT_PAD), lambda i: (i, 0)),
        ),
        compiler_params=pltpu.CompilerParams(
            dimension_semantics=("parallel",)),
    )(x2, params["w1"], params["b1"], params["w2"], params["b2"], w3p, b3p)

    class_probs = fused[:, :class_num]
    coords = fused[:, class_num:out_len].reshape((-1, len_traj_pred, 2))
    return class_probs, coords


def navibridge_forward(func_name, params, *, embedding_dim, class_num,
                       len_traj_pred, **kwargs):
    """Mirror of NaviBridge.forward dispatch."""
    if func_name == "states_pred_net":
        return states_pred_net(kwargs["obsgoal_cond"], params,
                               embedding_dim=embedding_dim,
                               class_num=class_num,
                               len_traj_pred=len_traj_pred)
    # TODO(synk): vision_encoder / noise_pred_net / dist_pred_net are
    # externally-injected submodules with no definition in this file.
    raise NotImplementedError(func_name)


def init_params(key, embedding_dim, class_num, len_traj_pred):
    """Deterministic synthetic weights (Linear layers stored as [in, out])."""
    E = embedding_dim
    H1, H2 = E // 4, E // 16
    out_len = class_num + 2 * len_traj_pred
    k1, k2, k3, k4, k5, k6 = jax.random.split(key, 6)
    scale = 0.1
    return {
        "w1": scale * jax.random.normal(k1, (E, H1), jnp.float32),
        "b1": scale * jax.random.normal(k2, (1, H1), jnp.float32),
        "w2": scale * jax.random.normal(k3, (H1, H2), jnp.float32),
        "b2": scale * jax.random.normal(k4, (1, H2), jnp.float32),
        "w3": scale * jax.random.normal(k5, (H2, out_len), jnp.float32),
        "b3": scale * jax.random.normal(k6, (1, out_len), jnp.float32),
    }


def _reference(x, params, embedding_dim, class_num, len_traj_pred):
    x2 = x.reshape((-1, embedding_dim)).astype(jnp.float32)
    h1 = jnp.maximum(x2 @ params["w1"] + params["b1"], 0.0)
    h2 = jnp.maximum(h1 @ params["w2"] + params["b2"], 0.0)
    out = h2 @ params["w3"] + params["b3"]
    probs = jax.nn.softmax(out[:, :class_num], axis=-1)
    coords = out[:, class_num:].reshape((-1, len_traj_pred, 2))
    return probs, coords


if __name__ == "__main__":
    embedding_dim = 64
    class_num = 5
    len_traj_pred = 8

    key = jax.random.PRNGKey(0)
    k_x, k_p = jax.random.split(key)

    # Input: (batch=2, context=4, embedding_dim=64) -> flattened to (8, 64)
    x = jax.random.normal(k_x, (2, 4, embedding_dim), jnp.float32)
    raw_params = init_params(k_p, embedding_dim, class_num, len_traj_pred)
    # One-time weight prep (padding hoisted out of the forward path).
    params = prepare_params(raw_params, class_num=class_num,
                            len_traj_pred=len_traj_pred)

    probs, coords = navibridge_forward(
        "states_pred_net", params,
        embedding_dim=embedding_dim,
        class_num=class_num,
        len_traj_pred=len_traj_pred,
        obsgoal_cond=x,
    )
    probs = jax.block_until_ready(probs)
    coords = jax.block_until_ready(coords)

    ref_probs, ref_coords = _reference(x, raw_params, embedding_dim,
                                       class_num, len_traj_pred)
    assert probs.shape == (8, class_num)
    assert coords.shape == (8, len_traj_pred, 2)
    assert jnp.allclose(probs, ref_probs, atol=1e-5, rtol=1e-5)
    assert jnp.allclose(coords, ref_coords, atol=1e-5, rtol=1e-5)

    print("KERNEL_OK")
</pallas_src>

<mosaic_0001>
module attributes {stable_mosaic.version = 11 : i64} {
  func.func @_states_pred_kernel(%arg0: i32, %arg1: memref<8x64xf32, #tpu.memory_space<vmem>>, %arg2: memref<64x16xf32, #tpu.memory_space<vmem>>, %arg3: memref<1x16xf32, #tpu.memory_space<vmem>>, %arg4: memref<16x4xf32, #tpu.memory_space<vmem>>, %arg5: memref<1x4xf32, #tpu.memory_space<vmem>>, %arg6: memref<4x32xf32, #tpu.memory_space<vmem>>, %arg7: memref<1x32xf32, #tpu.memory_space<vmem>>, %arg8: memref<8x32xf32, #tpu.memory_space<vmem>>) attributes {dimension_semantics = [#tpu.dimension_semantics<parallel>], iteration_bounds = array<i64: 1>, scalar_prefetch = 0 : i64, scratch_operands = 0 : i64, tpu.core_type = #tpu.core_type<tc>, window_params = [{transform_indices = @transform_0, window_bounds = array<i64: 8, 64>}, {pipeline_mode = #tpu.pipeline_mode<synchronous>, transform_indices = @transform_1, window_bounds = array<i64: 64, 16>}, {pipeline_mode = #tpu.pipeline_mode<synchronous>, transform_indices = @transform_2, window_bounds = array<i64: 1, 16>}, {pipeline_mode = #tpu.pipeline_mode<synchronous>, transform_indices = @transform_3, window_bounds = array<i64: 16, 4>}, {pipeline_mode = #tpu.pipeline_mode<synchronous>, transform_indices = @transform_4, window_bounds = array<i64: 1, 4>}, {pipeline_mode = #tpu.pipeline_mode<synchronous>, transform_indices = @transform_5, window_bounds = array<i64: 4, 32>}, {pipeline_mode = #tpu.pipeline_mode<synchronous>, transform_indices = @transform_6, window_bounds = array<i64: 1, 32>}, {transform_indices = @transform_7, window_bounds = array<i64: 8, 32>}]} {
    %c0 = arith.constant 0 : index
    %c0_0 = arith.constant 0 : index
    %0 = vector.load %arg1[%c0, %c0_0] : memref<8x64xf32, #tpu.memory_space<vmem>>, vector<8x64xf32>
    %c0_1 = arith.constant 0 : index
    %c0_2 = arith.constant 0 : index
    %1 = vector.load %arg2[%c0_1, %c0_2] : memref<64x16xf32, #tpu.memory_space<vmem>>, vector<64x16xf32>
    %cst = arith.constant dense<0.000000e+00> : vector<8x16xf32>
    %2 = tpu.matmul %0, %1, %cst {dimension_numbers = #tpu.dot_dimension_numbers<[1], [0], [0], [1], [0, 0, 1, 1], [], []>} : vector<8x64xf32>, vector<64x16xf32>, vector<8x16xf32> -> vector<8x16xf32>
    %c0_3 = arith.constant 0 : index
    %c0_4 = arith.constant 0 : index
    %3 = vector.load %arg3[%c0_3, %c0_4] : memref<1x16xf32, #tpu.memory_space<vmem>>, vector<1x16xf32>
    %4 = vector.broadcast %3 : vector<1x16xf32> to vector<8x16xf32>
    %5 = arith.addf %2, %4 : vector<8x16xf32>
    %cst_5 = arith.constant 0.000000e+00 : f32
    %6 = vector.broadcast %cst_5 : f32 to vector<8x16xf32>
    %7 = arith.maximumf %5, %6 : vector<8x16xf32>
    %c0_6 = arith.constant 0 : index
    %c0_7 = arith.constant 0 : index
    %8 = vector.load %arg4[%c0_6, %c0_7] : memref<16x4xf32, #tpu.memory_space<vmem>>, vector<16x4xf32>
    %cst_8 = arith.constant dense<0.000000e+00> : vector<8x4xf32>
    %9 = tpu.matmul %7, %8, %cst_8 {dimension_numbers = #tpu.dot_dimension_numbers<[1], [0], [0], [1], [0, 0, 1, 1], [], []>} : vector<8x16xf32>, vector<16x4xf32>, vector<8x4xf32> -> vector<8x4xf32>
    %c0_9 = arith.constant 0 : index
    %c0_10 = arith.constant 0 : index
    %10 = vector.load %arg5[%c0_9, %c0_10] : memref<1x4xf32, #tpu.memory_space<vmem>>, vector<1x4xf32>
    %11 = vector.broadcast %10 : vector<1x4xf32> to vector<8x4xf32>
    %12 = arith.addf %9, %11 : vector<8x4xf32>
    %cst_11 = arith.constant 0.000000e+00 : f32
    %13 = vector.broadcast %cst_11 : f32 to vector<8x4xf32>
    %14 = arith.maximumf %12, %13 : vector<8x4xf32>
    %c0_12 = arith.constant 0 : index
    %c0_13 = arith.constant 0 : index
    %15 = vector.load %arg6[%c0_12, %c0_13] : memref<4x32xf32, #tpu.memory_space<vmem>>, vector<4x32xf32>
    %c0_14 = arith.constant 0 : index
    %c0_15 = arith.constant 0 : index
    %16 = vector.load %arg7[%c0_14, %c0_15] : memref<1x32xf32, #tpu.memory_space<vmem>>, vector<1x32xf32>
    %17 = vector.shape_cast %16 : vector<1x32xf32> to vector<1x32xf32>
    %18 = vector.broadcast %17 : vector<1x32xf32> to vector<8x32xf32>
    %19 = vector.extract_strided_slice %14 {offsets = [0, 0], sizes = [8, 1], strides = [1, 1]} : vector<8x4xf32> to vector<8x1xf32>
    %20 = vector.extract_strided_slice %15 {offsets = [0, 0], sizes = [1, 32], strides = [1, 1]} : vector<4x32xf32> to vector<1x32xf32>
    %21 = vector.broadcast %19 : vector<8x1xf32> to vector<8x32xf32>
    %22 = vector.broadcast %20 : vector<1x32xf32> to vector<8x32xf32>
    %23 = arith.mulf %21, %22 : vector<8x32xf32>
    %24 = arith.addf %18, %23 : vector<8x32xf32>
    %25 = vector.extract_strided_slice %14 {offsets = [0, 1], sizes = [8, 1], strides = [1, 1]} : vector<8x4xf32> to vector<8x1xf32>
    %26 = vector.extract_strided_slice %15 {offsets = [1, 0], sizes = [1, 32], strides = [1, 1]} : vector<4x32xf32> to vector<1x32xf32>
    %27 = vector.broadcast %25 : vector<8x1xf32> to vector<8x32xf32>
    %28 = vector.broadcast %26 : vector<1x32xf32> to vector<8x32xf32>
    %29 = arith.mulf %27, %28 : vector<8x32xf32>
    %30 = arith.addf %24, %29 : vector<8x32xf32>
    %31 = vector.extract_strided_slice %14 {offsets = [0, 2], sizes = [8, 1], strides = [1, 1]} : vector<8x4xf32> to vector<8x1xf32>
    %32 = vector.extract_strided_slice %15 {offsets = [2, 0], sizes = [1, 32], strides = [1, 1]} : vector<4x32xf32> to vector<1x32xf32>
    %33 = vector.broadcast %31 : vector<8x1xf32> to vector<8x32xf32>
    %34 = vector.broadcast %32 : vector<1x32xf32> to vector<8x32xf32>
    %35 = arith.mulf %33, %34 : vector<8x32xf32>
    %36 = arith.addf %30, %35 : vector<8x32xf32>
    %37 = vector.extract_strided_slice %14 {offsets = [0, 3], sizes = [8, 1], strides = [1, 1]} : vector<8x4xf32> to vector<8x1xf32>
    %38 = vector.extract_strided_slice %15 {offsets = [3, 0], sizes = [1, 32], strides = [1, 1]} : vector<4x32xf32> to vector<1x32xf32>
    %39 = vector.broadcast %37 : vector<8x1xf32> to vector<8x32xf32>
    %40 = vector.broadcast %38 : vector<1x32xf32> to vector<8x32xf32>
    %41 = arith.mulf %39, %40 : vector<8x32xf32>
    %42 = arith.addf %36, %41 : vector<8x32xf32>
    %43 = tpu.iota {dimensions = array<i32: 1>} : vector<8x32xi32>
    %c5_i32 = arith.constant 5 : i32
    %44 = vector.broadcast %c5_i32 : i32 to vector<8x32xi32>
    %45 = arith.cmpi slt, %43, %44 : vector<8x32xi32>
    %c5_i32_16 = arith.constant 5 : i32
    %46 = vector.broadcast %c5_i32_16 : i32 to vector<8x32xi32>
    %47 = arith.cmpi sge, %43, %46 : vector<8x32xi32>
    %c21_i32 = arith.constant 21 : i32
    %48 = vector.broadcast %c21_i32 : i32 to vector<8x32xi32>
    %49 = arith.cmpi slt, %43, %48 : vector<8x32xi32>
    %50 = arith.andi %47, %49 : vector<8x32xi1>
    %cst_17 = arith.constant -1.000000e+30 : f32
    %51 = vector.broadcast %cst_17 : f32 to vector<8x32xf32>
    %52 = arith.select %45, %42, %51 : vector<8x32xi1>, vector<8x32xf32>
    %cst_18 = arith.constant dense<0xFF800000> : vector<8xf32>
    %53 = vector.multi_reduction <maximumf>, %52, %cst_18 [1] : vector<8x32xf32> to vector<8xf32>
    %54 = vector.shape_cast %53 : vector<8xf32> to vector<8x1xf32>
    %55 = vector.broadcast %54 : vector<8x1xf32> to vector<8x32xf32>
    %56 = arith.subf %52, %55 : vector<8x32xf32>
    %57 = math.exp %56 : vector<8x32xf32>
    %cst_19 = arith.constant dense<0.000000e+00> : vector<8xf32>
    %58 = vector.multi_reduction <add>, %57, %cst_19 [1] : vector<8x32xf32> to vector<8xf32>
    %59 = vector.shape_cast %58 : vector<8xf32> to vector<8x1xf32>
    %60 = vector.broadcast %59 : vector<8x1xf32> to vector<8x32xf32>
    %61 = arith.divf %57, %60 : vector<8x32xf32>
    %cst_20 = arith.constant 0.000000e+00 : f32
    %62 = vector.broadcast %cst_20 : f32 to vector<8x32xf32>
    %63 = arith.select %50, %42, %62 : vector<8x32xi1>, vector<8x32xf32>
    %64 = arith.select %45, %61, %63 : vector<8x32xi1>, vector<8x32xf32>
    %c0_21 = arith.constant 0 : index
    %c0_22 = arith.constant 0 : index
    %65 = vector.load %arg8[%c0_21, %c0_22] : memref<8x32xf32, #tpu.memory_space<vmem>>, vector<8x32xf32>
    tpu.vector_store %arg8[%c0_21, %c0_22], %64 {strides = array<i32>} : memref<8x32xf32, #tpu.memory_space<vmem>>, vector<8x32xf32>,
    return
  }
  func.func @transform_0(%arg0: i32) -> (i32, i32) {
    %c0_i32 = arith.constant 0 : i32
    %c0_i32_0 = arith.constant 0 : i32
    return %arg0, %c0_i32 : i32, i32
  }
  func.func @transform_1(%arg0: i32) -> (i32, i32) {
    %c0_i32 = arith.constant 0 : i32
    %c0_i32_0 = arith.constant 0 : i32
    %c0_i32_1 = arith.constant 0 : i32
    return %c0_i32, %c0_i32_0 : i32, i32
  }
  func.func @transform_2(%arg0: i32) -> (i32, i32) {
    %c0_i32 = arith.constant 0 : i32
    %c0_i32_0 = arith.constant 0 : i32
    %c0_i32_1 = arith.constant 0 : i32
    return %c0_i32, %c0_i32_0 : i32, i32
  }
  func.func @transform_3(%arg0: i32) -> (i32, i32) {
    %c0_i32 = arith.constant 0 : i32
    %c0_i32_0 = arith.constant 0 : i32
    %c0_i32_1 = arith.constant 0 : i32
    return %c0_i32, %c0_i32_0 : i32, i32
  }
  func.func @transform_4(%arg0: i32) -> (i32, i32) {
    %c0_i32 = arith.constant 0 : i32
    %c0_i32_0 = arith.constant 0 : i32
    %c0_i32_1 = arith.constant 0 : i32
    return %c0_i32, %c0_i32_0 : i32, i32
  }
  func.func @transform_5(%arg0: i32) -> (i32, i32) {
    %c0_i32 = arith.constant 0 : i32
    %c0_i32_0 = arith.constant 0 : i32
    %c0_i32_1 = arith.constant 0 : i32
    return %c0_i32, %c0_i32_0 : i32, i32
  }
  func.func @transform_6(%arg0: i32) -> (i32, i32) {
    %c0_i32 = arith.constant 0 : i32
    %c0_i32_0 = arith.constant 0 : i32
    %c0_i32_1 = arith.constant 0 : i32
    return %c0_i32, %c0_i32_0 : i32, i32
  }
  func.func @transform_7(%arg0: i32) -> (i32, i32) {
    %c0_i32 = arith.constant 0 : i32
    %c0_i32_0 = arith.constant 0 : i32
    return %arg0, %c0_i32 : i32, i32
  }
}

</mosaic_0001>

<bundles_post_ra>
// kernel: tpu_custom_call.1
= control target key start
LH: loop header
LB: loop body
LE: loop exit
PB: predicated region body
PF: predicated region fallthrough
CT: control target
= control target key end

     0   :  { %v386_v3 = vmov 0.0|0.0   ;;  %vm387_vm0 = vmmov 0   ;;  %v388_v6 = vmov 0.0   ;;  %s502_s0 = inlined_call_operand.vmem [shape: f32[8,64], index: 0, kind: input, shape index: {}]   ;;  %s503_s1 = inlined_call_operand.vmem [shape: f32[64,16], index: 1, kind: input, shape index: {}]   ;;  %s504_s2 = inlined_call_operand.vmem [shape: f32[1,16], index: 2, kind: input, shape index: {}]   ;;  %s505_s3 = inlined_call_operand.vmem [shape: f32[16,4], index: 3, kind: input, shape index: {}]   ;;  %s506_s4 = inlined_call_operand.vmem [shape: f32[1,4], index: 4, kind: input, shape index: {}]   ;;  %s507_s5 = inlined_call_operand.vmem [shape: f32[4,32], index: 5, kind: input, shape index: {}]   ;;  %s508_s6 = inlined_call_operand.vmem [shape: f32[1,32], index: 6, kind: input, shape index: {}]   ;;  %s509_s7 = inlined_call_operand.hbm [shape: f32[8,32], index: 7, kind: output, shape index: {}]  }
   0x1   :  { %v28_v0 = vld [vmem:[%s503_s1] sm:$0xff]  ;;  %v29_v1 = vld [vmem:[%s503_s1 + $0x8] sm:$0xff]  ;;  %v30_v2 = vld [vmem:[%s503_s1 + $0x10] sm:$0xff]  ;;  %330 = vmatprep.subr.bf16.mxu0 %v386_v3  ;;  %320 = vmatprep.mubr.msk.f32.mxu0 %vm387_vm0, %v388_v6 }
   0x2   :  { %v331_v4 = vpack.c.bf16 %v29_v1, %v28_v0  ;;  %v31_v5 = vld [vmem:[%s503_s1 + $0x18] sm:$0xff]  ;;  %342 = vmatprep.subr.bf16.mxu1 %v386_v3  ;;  %327 = vmatprep.mubr.msk.f32.mxu1 %vm387_vm0, %v388_v6 }
   0x3   :  { %v334_v7 = vpack.c.bf16 %v31_v5, %v30_v2 }
   0x4   :  { %332 = vmatpush3.bf16.msra.mxu0 %v331_v4 }
   0x5   :  { %12 = vsyncpa [#allocation3], 0  ;;  %333 = vmatprep.subr.bf16.mxu0 %v386_v3  ;;  %v32_v8 = vld [vmem:[%s503_s1 + $0x20] sm:$0xff]  ;;  %v33_v9 = vld [vmem:[%s503_s1 + $0x28] sm:$0xff]  ;;  %vm43_vm1 = vcmask 523264   ;;  %vm127_vm2 = vcmask 130048   ;;  %v215_v32 = vlaneseq }
   0x6   :  { %v337_v10 = vpack.c.bf16 %v33_v9, %v32_v8  ;;  %v34_v11 = vld [vmem:[%s503_s1 + $0x30] sm:$0xff]  ;;  %v35_v12 = vld [vmem:[%s503_s1 + $0x38] sm:$0xff]  ;;  %v27_v14 = vld [vmem:[%s502_s0] sm:$0xff]  ;;  %v389_v23 = vmov 2   ;;  %v390_v24 = vmov 0   ;;  %v391_v30 = vmov 3  }
   0x7   :  { %v340_v13 = vpack.c.bf16 %v35_v12, %v34_v11  ;;  %v118_v15 = vld [vmem:[%s505_s3] sm:$0xff]  ;;  %v119_v16 = vld [vmem:[%s505_s3 + $0x8] sm:$0xff]  ;;  %355 = vset.pattern.permute.xlu1 %v389_v23  ;;  %353 = vset.pattern.permute.xlu0 %v390_v24  ;;  %v392_v31 = vmov 1   ;;  %v216_v33 = vshrl.u32 %v215_v32, 7  ;;  %v252_v46 = vand.u32 127, %v215_v32 }
   0x8   :  { %335 = vmatpush3.bf16.msra.mxu0 %v334_v7  ;;  %v343_v17 = vpack.c.bf16 %v119_v16, %v118_v15  ;;  %v287_v18 = vld [vmem:[%s504_s2] ss:$0 sm:$0xff]  ;;  %vm258_vm7 = vcmask 261120  }
   0x9   :  { %336 = vmatprep.subr.bf16.mxu0 %v386_v3  ;;  %v289_v25 = vld [vmem:[%s506_s4] ss:$0 sm:$0xff]  ;;  %v217_v34 = vsub.s32 0, %v216_v33  ;;  %v227_v37 = vsub.s32 1, %v216_v33  ;;  %v237_v38 = vsub.s32 2, %v216_v33  ;;  %v247_v42 = vsub.s32 3, %v216_v33 }
   0xa   :  { %344 = vmatpush3.bf16.msra.mxu1 %v343_v17  ;;  %v202_v35 = vld [vmem:[%s507_s5] sm:$0xf]  ;;  %vm254_vm3 = vcmp.ge.s32.totalorder %v252_v46, 5  ;;  %vm255_vm4 = vcmp.lt.s32.totalorder %v252_v46, 21  ;;  %vm253_vm5 = vcmp.lt.s32.totalorder %v252_v46, 5  ;;  %s393_s5 = smov [#allocation2]  }
   0xb   :  { %v218_v36 = vrot.slane %v202_v35, %v217_v34  ;;  %v228_v43 = vrot.slane %v202_v35, %v227_v37  ;;  %v291_v44 = vld [vmem:[%s508_s6] ss:$0 sm:$0xff]  ;;  %v238_v45 = vrot.slane %v202_v35, %v237_v38  ;;  %v248_v49 = vrot.slane %v202_v35, %v247_v42  ;;  %vm479_vm6 = vmand %vm254_vm3, %vm255_vm4  ;;  %s279_s6 = sshll.u32 %s393_s5, 4  ;;  %s280_s6 = int_to_ptr.vmem [resolvable:$true] %s279_s6 }
   0xc   :  { %338 = vmatpush3.bf16.msra.mxu0 %v337_v10  ;;  %s362_s26 = scalar_lea.vmem %s280_s6, 128  ;;  %p367_p1 = scmp.lt.s32.totalorder %s280_s6, %s280_s6 }
   0xd   :  { %339 = vmatprep.subr.bf16.mxu0 %v386_v3  ;;  %p363_p0 = scmp.ne.s32.totalorder %s280_s6, %s362_s26  ;;  %p368_p2 = scmp.lt.s32.totalorder %s362_s26, %s362_s26 }
   0xf   :  { %p369_p3 = por %p368_p2, %p367_p1 }
  0x10   :  { %341 = vmatpush3.bf16.msra.mxu0 %v340_v13 }
  0x11   :  { %p370_p4 = pnand %p369_p3, %p363_p0 }
  0x13   :  { %321 = vmatmul.mubr.msk.f32.vlgmr.msra.gmra.mrb[0].mxu0 %vm43_vm1, %v27_v14 }
  0xe6   :  { %v113_v19 = vpop.f32.mrb[0].mxu0 }
  0xe7   :  { %v114_v20 = vadd.f32 %v287_v18, %v113_v19  ;;  %v322_v21 = vpop.f32.mrb[1].mxu0 }
  0xe9   :  { %v117_v22 = vmax.f32 %v114_v20, 0.0 }
  0xeb   :  { %328 = vmatmul.mubr.msk.f32.vlgmr.msra.gmra.mrb[0].mxu1 %vm127_vm2, %v117_v22 }
 0x1be   :  { %v197_v26 = vpop.f32.mrb[0].mxu1 }
 0x1bf   :  { %v198_v27 = vadd.f32 %v289_v25, %v197_v26  ;;  %v329_v28 = vpop.f32.mrb[1].mxu1 }
 0x1c1   :  { %v201_v29 = vmax.f32 %v198_v27, 0.0 }
 0x1c3   :  { %232 = vperm.xlu1 %355, %v201_v29   ;;  %212 = vperm.xlu0 %353, %v201_v29  }
 0x1c7   :  { %356 = vset.pattern.permute.xlu1 %v391_v30  ;;  %354 = vset.pattern.permute.xlu0 %v392_v31 }
 0x1c8   :  { %242 = vperm.xlu1 %356, %v201_v29   ;;  %222 = vperm.xlu0 %354, %v201_v29  }
 0x1cc   :  { %357 = vset.pattern.permute.xlu0 %v391_v30 }
 0x242   :  { %v213_v39 = vpop.permute.xlu0 %212  ;;  %v233_v40 = vpop.permute.xlu1 %232 }
 0x243   :  { %v219_v41 = vmul.f32 %v218_v36, %v213_v39  ;;  %v239_v52 = vmul.f32 %v238_v45, %v233_v40 }
 0x245   :  { %v220_v48 = vadd.f32 %v291_v44, %v219_v41 }
 0x247   :  { %v223_v47 = vpop.permute.xlu0 %222  ;;  %v243_v51 = vpop.permute.xlu1 %242 }
 0x248   :  { %v229_v50 = vmul.f32 %v228_v43, %v223_v47  ;;  %v249_v54 = vmul.f32 %v248_v49, %v243_v51 }
 0x24a   :  { %v230_v53 = vadd.f32 %v229_v50, %v220_v48 }
 0x24c   :  { %v240_v55 = vadd.f32 %v239_v52, %v230_v53 }
 0x24e   :  { %v250_v57 = vadd.f32 %v249_v54, %v240_v55 }
 0x250   :  { %v257_v58 = vsel %vm253_vm5, %v250_v57, -1e+30  ;;  %v270_v59 = vsel %vm479_vm6, %v250_v57, 0.0 }
 0x251   :  { %v259_v60 = vsel %vm258_vm7, %v257_v58, -inf }
 0x252   :  { %260 = vmax.xlane.f32.xlu1 %v259_v60 }
 0x2df   :  { %v261_v61 = vpop.xlane.xlu1 %260 }
 0x2e0   :  { %v262_v62 = vsub.f32 %v257_v58, %v261_v61 }
 0x2e2   :  { %v263_v63 = vmul.f32 1.442695, %v262_v62 }
 0x2e4   :  { %358 = vpow2.f32 %v263_v63 }
 0x2ee   :  { %v359_v0 = vpop.eup %358 }
 0x2ef   :  { %v265_v1 = vsel %vm258_vm7, %v359_v0, 0.0 }
 0x2f0   :  { %266 = vadd.xlane.f32.xlu0 %v265_v1 }
 0x37d   :  { %v267_v2 = vpop.xlane.xlu0 %266 }
 0x37e   :  { %360 = vrcp.f32 %v267_v2 }
 0x388   :  { %v361_v3 = vpop.eup %360 }
 0x389   :  { %v269_v4 = vmul.f32 %v361_v3, %v359_v0 }
 0x38b   :  { %v271_v5 = vsel %vm253_vm5, %v269_v4, %v270_v59 }
 0x38c   :  { %272 = vst.msk [vmem:[#allocation2] sm:$0xff] %vm258_vm7, %v271_v5 }
 0x38d   :  { %373 = shalt.err (!%p370_p4)
}
 0x38e   :  { %s374_s29 = scalar_lea.hbm %s509_s7, 128 }
 0x38f   :  { %p375_p5 = scmp.ne.s32.totalorder %s509_s7, %s374_s29  ;;  %p378_p6 = scmp.lt.u32.totalorder %s374_s29, %s509_s7 }
 0x391   :  { %p380_p7 = pnand %p378_p6, %p375_p5 }
 0x393   :  { %383 = shalt.err (!%p380_p7)
}
 0x394   :  { %282 = dma.vmem_to_hbm [thread:$0]  %s280_s6, 128, %s509_s7, [#allocation3]  }
 0x395   :  { %384 = dma.done.wait [#allocation3], 128  }
 0x396   :  { %385 = vsyncadd [#allocation3], 4294967168 }
 0x397   :  { %286 = vsyncpa [#allocation3], 1 }

</bundles_post_ra>
